<compile_context>
chip_gen: v5e
topology: v5e:2x2
jax: 0.10.0
libtpu: 0.0.40
codegen_flags: <defaults>
</compile_context>

<pallas_src>
import jax
import jax.numpy as jnp
from jax.experimental import pallas as pl
from jax.experimental.pallas import tpu as pltpu

HALF_LOG_2PI = 0.9189385  # intentionally the truncated constant used by the PyTorch module


def gaussian_kernel(y_ref, consts_ref, o_ref):
    # y_ref: (TM, 1) f32; consts_ref: (3, K) f32; o_ref: (TM, K) out_dtype
    mean = consts_ref[0:1, :]            # (1, K)
    a = consts_ref[1:2, :]               # (1, K) = 1 / (std * sqrt(2))
    c = consts_ref[2:3, :]               # (1, K) = -log(std) - 0.9189385
    z = (y_ref[...] - mean) * a          # (TM, K) broadcast
    o_ref[...] = jnp.exp(c - z * z).astype(o_ref.dtype)


def _choose_tile(M, tm, K, out_itemsize, vmem_budget=40 << 20):
    """Pick a row tile: multiple of 8, VMEM-budgeted, preferring a divisor of M."""
    tm = max(8, (tm // 8) * 8)

    def working_set(t):
        # double-buffered: lane-padded (t,1)->(t,128) f32 input + (t,K) output
        return 2 * t * 128 * 4 + 2 * t * K * out_itemsize

    while tm > 1024 and working_set(tm) > vmem_budget:
        tm //= 2

    if M <= tm:
        return M  # single full block (block == array dims is always legal)

    # Prefer an exact divisor (multiple of 8) -> no ragged tail block at all.
    lo = max(tm - 4096, tm // 2, 8)
    for cand in range(tm, lo - 1, -8):
        if M % cand == 0:
            return cand
    return tm  # ragged tail block handled by Pallas boundary masking


def gaussian_layer_forward(x, edge_type, means_w, stds_w, mul_w, bias_w,
                           *, tm=8192, out_dtype=jnp.float32):
    """x: (B, N, N) float, edge_type: (B, N, N) int.
    means_w/stds_w: (1, K); mul_w/bias_w: (edge_types, 1).
    Returns (B, N, N, K) `out_dtype`.  `out_dtype=jnp.bfloat16` halves HBM
    write traffic (the kernel is write-bound); math is always f32."""
    B, N1, N2 = x.shape
    K = means_w.shape[-1]
    M = B * N1 * N2
    out_itemsize = jnp.dtype(out_dtype).itemsize

    # --- hoisted per-K constants (no divide/log/abs/-0.5 in the hot loop) ---
    std = jnp.abs(stds_w.reshape(1, K).astype(jnp.float32)) + 1e-5
    mean = means_w.reshape(1, K).astype(jnp.float32)
    a = (1.0 / std) * (0.5 ** 0.5)                 # folds the -0.5 into the scale
    c = -jnp.log(std) - HALF_LOG_2PI
    consts = jnp.concatenate([mean, a, c], axis=0)  # (3, K) f32

    # --- fuse mul*x + bias once in the wrapper -> single (M, 1) row stream ---
    # TODO(synk): if this (edge_types,)-table gather over M indices ever lowers
    # to a slow per-element XLA path, move the tiny tables into the kernel as
    # VMEM-resident inputs and do the lookup there.
    et = edge_type.reshape(-1)
    y = (mul_w.reshape(-1)[et].astype(jnp.float32) * x.reshape(-1).astype(jnp.float32)
         + bias_w.reshape(-1)[et].astype(jnp.float32)).reshape(M, 1)

    tm_eff = _choose_tile(M, tm, K, out_itemsize)
    grid = (pl.cdiv(M, tm_eff),)

    # Explicit VMEM budget: lane-padded y buffers + output buffers + consts.
    vmem_needed = (2 * tm_eff * 128 * 4
                   + 2 * tm_eff * K * out_itemsize
                   + 2 * 3 * K * 4 + (1 << 16))
    vmem_limit = int(min(vmem_needed + (4 << 20), 56 << 20))

    cost = pl.CostEstimate(
        flops=4 * M * K,
        transcendentals=M * K,
        bytes_accessed=M * K * out_itemsize + M * 4 + 3 * K * 4,
    )

    out = pl.pallas_call(
        gaussian_kernel,
        out_shape=jax.ShapeDtypeStruct((M, K), out_dtype),
        grid_spec=pltpu.PrefetchScalarGridSpec(
            num_scalar_prefetch=0,
            grid=grid,
            in_specs=[
                pl.BlockSpec((tm_eff, 1), lambda i: (i, 0)),   # fused y = mul*x+bias
                pl.BlockSpec((3, K), lambda i: (0, 0)),        # [mean; 1/(std*sqrt2); -log(std)-c]
            ],
            out_specs=pl.BlockSpec((tm_eff, K), lambda i: (i, 0)),
        ),
        compiler_params=pltpu.CompilerParams(
            dimension_semantics=("parallel",),
            vmem_limit_bytes=vmem_limit),
        cost_estimate=cost,
    )(y, consts)

    return out.reshape(B, N1, N2, K)


def gaussian_layer_ref(x, edge_type, means_w, stds_w, mul_w, bias_w):
    """Pure-JAX reference matching the PyTorch forward."""
    K = means_w.shape[-1]
    mul = mul_w[edge_type]            # (B, N, N, 1)
    bias = bias_w[edge_type]          # (B, N, N, 1)
    y = mul * x[..., None] + bias     # (B, N, N, 1)
    y = jnp.broadcast_to(y, y.shape[:-1] + (K,)).astype(jnp.float32)
    mean = means_w.reshape(-1).astype(jnp.float32)
    std = jnp.abs(stds_w.reshape(-1).astype(jnp.float32)) + 1e-5
    return jnp.exp(-0.5 * ((y - mean) / std) ** 2 - jnp.log(std) - HALF_LOG_2PI)


if __name__ == "__main__":
    K = 128
    EDGE_TYPES = 1024
    B, N = 2, 8

    key = jax.random.PRNGKey(0)
    k_means, k_stds, k_x, k_et = jax.random.split(key, 4)

    # Parameter init matching nn.init in the module (deterministic).
    means_w = jax.random.uniform(k_means, (1, K), jnp.float32, 0.0, 3.0)
    stds_w = jax.random.uniform(k_stds, (1, K), jnp.float32, 0.0, 3.0)
    mul_w = jnp.ones((EDGE_TYPES, 1), jnp.float32)    # constant 1
    bias_w = jnp.zeros((EDGE_TYPES, 1), jnp.float32)  # constant 0

    # Example inputs.
    x = jax.random.uniform(k_x, (B, N, N), jnp.float32, 0.0, 5.0)
    edge_type = jax.random.randint(k_et, (B, N, N), 0, EDGE_TYPES, jnp.int32)
    ref = gaussian_layer_ref(x, edge_type, means_w, stds_w, mul_w, bias_w)

    # 1) Default path (f32 output, single full block since M < tm).
    out = gaussian_layer_forward(x, edge_type, means_w, stds_w, mul_w, bias_w)
    out = jax.block_until_ready(out)
    assert out.shape == (B, N, N, K)
    assert jnp.allclose(out, ref, atol=1e-5, rtol=1e-5), "mismatch vs reference (f32)"

    # 2) bf16 fast path (halves HBM write traffic; math stays f32).
    out_bf16 = gaussian_layer_forward(x, edge_type, means_w, stds_w, mul_w, bias_w,
                                      out_dtype=jnp.bfloat16)
    out_bf16 = jax.block_until_ready(out_bf16)
    assert jnp.allclose(out_bf16.astype(jnp.float32), ref, atol=1e-2, rtol=1e-2), \
        "mismatch vs reference (bf16)"

    # 3) Ragged-tail path: M = 2*9*9 = 162 has no multiple-of-8 divisor, so the
    #    last grid block is partial and masked by Pallas (no pad / slice copy).
    x2 = jax.random.uniform(k_x, (2, 9, 9), jnp.float32, 0.0, 5.0)
    et2 = jax.random.randint(k_et, (2, 9, 9), 0, EDGE_TYPES, jnp.int32)
    ref2 = gaussian_layer_ref(x2, et2, means_w, stds_w, mul_w, bias_w)
    out2 = gaussian_layer_forward(x2, et2, means_w, stds_w, mul_w, bias_w, tm=48)
    out2 = jax.block_until_ready(out2)
    assert out2.shape == (2, 9, 9, K)
    assert jnp.allclose(out2, ref2, atol=1e-5, rtol=1e-5), "mismatch (ragged tail path)"

    print("KERNEL_OK")
</pallas_src>

<mosaic_0001>
module attributes {stable_mosaic.version = 11 : i64} {
  func.func @gaussian_kernel(%arg0: i32, %arg1: memref<128x1xf32, #tpu.memory_space<vmem>>, %arg2: memref<3x128xf32, #tpu.memory_space<vmem>>, %arg3: memref<128x128xf32, #tpu.memory_space<vmem>>) attributes {dimension_semantics = [#tpu.dimension_semantics<parallel>], iteration_bounds = array<i64: 1>, scalar_prefetch = 0 : i64, scratch_operands = 0 : i64, tpu.core_type = #tpu.core_type<tc>, window_params = [{transform_indices = @transform_0, window_bounds = array<i64: 128, 1>}, {pipeline_mode = #tpu.pipeline_mode<synchronous>, transform_indices = @transform_1, window_bounds = array<i64: 3, 128>}, {transform_indices = @transform_2, window_bounds = array<i64: 128, 128>}]} {
    %c0 = arith.constant 0 : index
    %c0_0 = arith.constant 0 : index
    %0 = vector.load %arg2[%c0, %c0_0] : memref<3x128xf32, #tpu.memory_space<vmem>>, vector<1x128xf32>
    %c1 = arith.constant 1 : index
    %c0_1 = arith.constant 0 : index
    %1 = vector.load %arg2[%c1, %c0_1] : memref<3x128xf32, #tpu.memory_space<vmem>>, vector<1x128xf32>
    %c2 = arith.constant 2 : index
    %c0_2 = arith.constant 0 : index
    %2 = vector.load %arg2[%c2, %c0_2] : memref<3x128xf32, #tpu.memory_space<vmem>>, vector<1x128xf32>
    %c0_3 = arith.constant 0 : index
    %c0_4 = arith.constant 0 : index
    %3 = vector.load %arg1[%c0_3, %c0_4] : memref<128x1xf32, #tpu.memory_space<vmem>>, vector<128x1xf32>
    %4 = vector.broadcast %3 : vector<128x1xf32> to vector<128x128xf32>
    %5 = vector.broadcast %0 : vector<1x128xf32> to vector<128x128xf32>
    %6 = arith.subf %4, %5 : vector<128x128xf32>
    %7 = vector.broadcast %1 : vector<1x128xf32> to vector<128x128xf32>
    %8 = arith.mulf %6, %7 : vector<128x128xf32>
    %9 = arith.mulf %8, %8 : vector<128x128xf32>
    %10 = vector.broadcast %2 : vector<1x128xf32> to vector<128x128xf32>
    %11 = arith.subf %10, %9 : vector<128x128xf32>
    %12 = math.exp %11 : vector<128x128xf32>
    %c0_5 = arith.constant 0 : index
    %c0_6 = arith.constant 0 : index
    %13 = vector.load %arg3[%c0_5, %c0_6] : memref<128x128xf32, #tpu.memory_space<vmem>>, vector<128x128xf32>
    tpu.vector_store %arg3[%c0_5, %c0_6], %12 {strides = array<i32>} : memref<128x128xf32, #tpu.memory_space<vmem>>, vector<128x128xf32>,
    return
  }
  func.func @transform_0(%arg0: i32) -> (i32, i32) {
    %c0_i32 = arith.constant 0 : i32
    %c0_i32_0 = arith.constant 0 : i32
    return %arg0, %c0_i32 : i32, i32
  }
  func.func @transform_1(%arg0: i32) -> (i32, i32) {
    %c0_i32 = arith.constant 0 : i32
    %c0_i32_0 = arith.constant 0 : i32
    %c0_i32_1 = arith.constant 0 : i32
    return %c0_i32, %c0_i32_0 : i32, i32
  }
  func.func @transform_2(%arg0: i32) -> (i32, i32) {
    %c0_i32 = arith.constant 0 : i32
    %c0_i32_0 = arith.constant 0 : i32
    return %arg0, %c0_i32 : i32, i32
  }
}

</mosaic_0001>

<bundles_post_ra>
// kernel: tpu_custom_call.1
= control target key start
LH: loop header
LB: loop body
LE: loop exit
PB: predicated region body
PF: predicated region fallthrough
CT: control target
= control target key end

     0   :  { %v312_v3 = vmov 0   ;;  %s445_s0 = inlined_call_operand.vmem [shape: f32[128,1], index: 0, kind: input, shape index: {}]   ;;  %s446_s1 = inlined_call_operand.vmem [shape: f32[3,128], index: 1, kind: input, shape index: {}]   ;;  %s447_s2 = inlined_call_operand.hbm [shape: f32[128,128], index: 2, kind: output, shape index: {}]  }
   0x1   :  { %v19_v0 = vld [vmem:[%s445_s0 + $0x20] sm:$0xff]  ;;  %v17_v1 = vld [vmem:[%s445_s0 + $0x10] sm:$0xff]  ;;  %250 = vset.pattern.permute.xlu2 %v312_v3  ;;  %249 = vset.pattern.permute.xlu1 %v312_v3 }
   0x2   :  { %v15_v2 = vld [vmem:[%s445_s0] sm:$0xff]  ;;  %248 = vset.pattern.permute.xlu0 %v312_v3  ;;  %53 = vperm.xlu2 %250, %v19_v0  }
   0x3   :  { %43 = vperm.xlu1 %249, %v17_v1   ;;  %33 = vperm.xlu0 %248, %v15_v2  }
   0x4   :  { %7 = vsyncpa [#allocation3], 0  ;;  %v20_v4 = vld [vmem:[%s445_s0 + $0x28] sm:$0xff]  ;;  %v18_v5 = vld [vmem:[%s445_s0 + $0x18] sm:$0xff]  ;;  %s232_s21 = sshll.u32 %s447_s2, 4  ;;  %s314_s22 = smov 128   ;;  %s233_s21 = int_to_ptr.hbm [resolvable:$true] %s232_s21 }
   0x5   :  { %v16_v6 = vld [vmem:[%s445_s0 + $0x8] sm:$0xff]  ;;  %v23_v7 = vld [vmem:[%s445_s0 + $0x40] sm:$0xff]  ;;  %v22_v8 = vld [vmem:[%s445_s0 + $0x38] sm:$0xff]  ;;  %s315_s23 = smov 8  }
   0x6   :  { %v21_v9 = vld [vmem:[%s445_s0 + $0x30] sm:$0xff]  ;;  %v26_v10 = vld [vmem:[%s445_s0 + $0x58] sm:$0xff]  ;;  %v24_v12 = vld [vmem:[%s445_s0 + $0x48] sm:$0xff] }
   0x7   :  { %v25_v11 = vld [vmem:[%s445_s0 + $0x50] sm:$0xff]  ;;  %v28_v14 = vld [vmem:[%s445_s0 + $0x68] sm:$0xff]  ;;  %v27_v15 = vld [vmem:[%s445_s0 + $0x60] sm:$0xff] }
   0x8   :  { %v29_v13 = vld [vmem:[%s445_s0 + $0x70] sm:$0xff]  ;;  %v30_v16 = vld [vmem:[%s445_s0 + $0x78] sm:$0xff]  ;;  %v382_v17 = vld [vmem:[%s446_s1] ss:$0 sm:$0xff]  ;;  %s313_s0 = smov [#allocation2]  }
   0x9   :  { %v388_v20 = vld [vmem:[%s446_s1 + $0x1] ss:$0 sm:$0xff]  ;;  %v394_v23 = vld [vmem:[%s446_s1 + $0x2] ss:$0 sm:$0xff]  ;;  %s230_s1 = sshll.u32 %s313_s0, 4  ;;  %s231_s1 = int_to_ptr.vmem [resolvable:$true] %s230_s1 }
   0xa   :  { %58 = vperm.xlu2 %250, %v20_v4  }
   0xb   :  { %48 = vperm.xlu1 %249, %v18_v5   ;;  %38 = vperm.xlu0 %248, %v16_v6  }
  0x12   :  { %73 = vperm.xlu2 %250, %v23_v7  }
  0x13   :  { %68 = vperm.xlu1 %249, %v22_v8   ;;  %63 = vperm.xlu0 %248, %v21_v9  }
  0x1a   :  { %88 = vperm.xlu2 %250, %v26_v10  }
  0x1b   :  { %83 = vperm.xlu1 %249, %v25_v11   ;;  %78 = vperm.xlu0 %248, %v24_v12  }
  0x22   :  { %103 = vperm.xlu2 %250, %v29_v13  }
  0x23   :  { %98 = vperm.xlu1 %249, %v28_v14   ;;  %93 = vperm.xlu0 %248, %v27_v15  }
  0x2b   :  { %108 = vperm.xlu0 %248, %v30_v16  }
  0x5c   :  { %v54_v18 = vpop.permute.xlu2 %53 }
  0x5d   :  { %v116_v19 = vsub.f32 %v54_v18, %v382_v17 }
  0x5f   :  { %v133_v21 = vmul.f32 %v388_v20, %v116_v19 }
  0x61   :  { %v149_v22 = vmul.f32 %v133_v21, %v133_v21 }
  0x63   :  { %v166_v24 = vsub.f32 %v394_v23, %v149_v22 }
  0x64   :  { %v59_v25 = vpop.permute.xlu2 %58 }
  0x65   :  { %v186_v26 = vmul.f32 1.442695, %v166_v24  ;;  %v117_v27 = vsub.f32 %v59_v25, %v382_v17 }
  0x67   :  { %254 = vpow2.f32 %v186_v26  ;;  %v134_v28 = vmul.f32 %v388_v20, %v117_v27 }
  0x69   :  { %v150_v29 = vmul.f32 %v134_v28, %v134_v28 }
  0x6b   :  { %v167_v30 = vsub.f32 %v394_v23, %v150_v29 }
  0x6c   :  { %v74_v31 = vpop.permute.xlu2 %73 }
  0x6d   :  { %v255_v32 = vpop.eup %254  ;;  %v188_v33 = vmul.f32 1.442695, %v167_v30  ;;  %v120_v34 = vsub.f32 %v74_v31, %v382_v17 }
  0x6e   :  { %214 = vst [vmem:[#allocation2 + $0x20] sm:$0xff] %v255_v32 }
  0x6f   :  { %256 = vpow2.f32 %v188_v33  ;;  %v137_v35 = vmul.f32 %v388_v20, %v120_v34 }
  0x71   :  { %v153_v36 = vmul.f32 %v137_v35, %v137_v35 }
  0x73   :  { %v170_v37 = vsub.f32 %v394_v23, %v153_v36 }
  0x74   :  { %v89_v38 = vpop.permute.xlu2 %88 }
  0x75   :  { %v257_v39 = vpop.eup %256  ;;  %v194_v40 = vmul.f32 1.442695, %v170_v37  ;;  %v123_v41 = vsub.f32 %v89_v38, %v382_v17  ;;  %v44_v42 = vpop.permute.xlu1 %43 }
  0x76   :  { %v34_v43 = vpop.permute.xlu0 %33  ;;  %215 = vst [vmem:[#allocation2 + $0x28] sm:$0xff] %v257_v39  ;;  %v114_v44 = vsub.f32 %v44_v42, %v382_v17 }
  0x77   :  { %v112_v45 = vsub.f32 %v34_v43, %v382_v17  ;;  %258 = vpow2.f32 %v194_v40  ;;  %v140_v46 = vmul.f32 %v388_v20, %v123_v41 }
  0x78   :  { %v131_v47 = vmul.f32 %v388_v20, %v114_v44 }
  0x79   :  { %v129_v48 = vmul.f32 %v388_v20, %v112_v45  ;;  %v156_v49 = vmul.f32 %v140_v46, %v140_v46 }
  0x7a   :  { %v147_v50 = vmul.f32 %v131_v47, %v131_v47 }
  0x7b   :  { %v145_v51 = vmul.f32 %v129_v48, %v129_v48  ;;  %v173_v52 = vsub.f32 %v394_v23, %v156_v49 }
  0x7c   :  { %v164_v53 = vsub.f32 %v394_v23, %v147_v50  ;;  %v104_v55 = vpop.permute.xlu2 %103 }
  0x7d   :  { %v162_v54 = vsub.f32 %v394_v23, %v145_v51  ;;  %v259_v56 = vpop.eup %258  ;;  %v200_v57 = vmul.f32 1.442695, %v173_v52  ;;  %v126_v58 = vsub.f32 %v104_v55, %v382_v17  ;;  %v49_v59 = vpop.permute.xlu1 %48 }
  0x7e   :  { %v39_v60 = vpop.permute.xlu0 %38  ;;  %218 = vst [vmem:[#allocation2 + $0x40] sm:$0xff] %v259_v56  ;;  %v182_v61 = vmul.f32 1.442695, %v164_v53  ;;  %v115_v63 = vsub.f32 %v49_v59, %v382_v17 }
  0x7f   :  { %v178_v62 = vmul.f32 1.442695, %v162_v54  ;;  %v113_v0 = vsub.f32 %v39_v60, %v382_v17  ;;  %260 = vpow2.f32 %v200_v57  ;;  %v143_v1 = vmul.f32 %v388_v20, %v126_v58 }
  0x80   :  { %262 = vpow2.f32 %v182_v61  ;;  %v132_v2 = vmul.f32 %v388_v20, %v115_v63 }
  0x81   :  { %v130_v3 = vmul.f32 %v388_v20, %v113_v0  ;;  %264 = vpow2.f32 %v178_v62  ;;  %v159_v4 = vmul.f32 %v143_v1, %v143_v1 }
  0x82   :  { %v148_v5 = vmul.f32 %v132_v2, %v132_v2 }
  0x83   :  { %v146_v6 = vmul.f32 %v130_v3, %v130_v3  ;;  %v176_v7 = vsub.f32 %v394_v23, %v159_v4 }
  0x84   :  { %v165_v8 = vsub.f32 %v394_v23, %v148_v5 }
  0x85   :  { %v163_v9 = vsub.f32 %v394_v23, %v146_v6  ;;  %v261_v10 = vpop.eup %260  ;;  %v206_v11 = vmul.f32 1.442695, %v176_v7  ;;  %v69_v12 = vpop.permute.xlu1 %68 }
  0x86   :  { %v64_v13 = vpop.permute.xlu0 %63  ;;  %v263_v14 = vpop.eup %262  ;;  %221 = vst [vmem:[#allocation2 + $0x58] sm:$0xff] %v261_v10  ;;  %v184_v15 = vmul.f32 1.442695, %v165_v8  ;;  %v119_v18 = vsub.f32 %v69_v12, %v382_v17 }
  0x87   :  { %v180_v16 = vmul.f32 1.442695, %v163_v9  ;;  %v118_v19 = vsub.f32 %v64_v13, %v382_v17  ;;  %v265_v21 = vpop.eup %264  ;;  %212 = vst [vmem:[#allocation2 + $0x10] sm:$0xff] %v263_v14  ;;  %266 = vpow2.f32 %v206_v11 }
  0x88   :  { %210 = vst [vmem:[#allocation2] sm:$0xff] %v265_v21  ;;  %268 = vpow2.f32 %v184_v15  ;;  %v136_v22 = vmul.f32 %v388_v20, %v119_v18 }
  0x89   :  { %v135_v24 = vmul.f32 %v388_v20, %v118_v19  ;;  %270 = vpow2.f32 %v180_v16 }
  0x8a   :  { %v152_v25 = vmul.f32 %v136_v22, %v136_v22 }
  0x8b   :  { %v151_v26 = vmul.f32 %v135_v24, %v135_v24 }
  0x8c   :  { %v169_v27 = vsub.f32 %v394_v23, %v152_v25 }
  0x8d   :  { %v168_v28 = vsub.f32 %v394_v23, %v151_v26  ;;  %v267_v29 = vpop.eup %266  ;;  %v84_v30 = vpop.permute.xlu1 %83 }
  0x8e   :  { %v79_v31 = vpop.permute.xlu0 %78  ;;  %v269_v32 = vpop.eup %268  ;;  %224 = vst [vmem:[#allocation2 + $0x70] sm:$0xff] %v267_v29  ;;  %v192_v33 = vmul.f32 1.442695, %v169_v27  ;;  %v122_v35 = vsub.f32 %v84_v30, %v382_v17 }
  0x8f   :  { %v190_v34 = vmul.f32 1.442695, %v168_v28  ;;  %v121_v36 = vsub.f32 %v79_v31, %v382_v17  ;;  %v271_v37 = vpop.eup %270  ;;  %213 = vst [vmem:[#allocation2 + $0x18] sm:$0xff] %v269_v32 }
  0x90   :  { %211 = vst [vmem:[#allocation2 + $0x8] sm:$0xff] %v271_v37  ;;  %272 = vpow2.f32 %v192_v33  ;;  %v139_v38 = vmul.f32 %v388_v20, %v122_v35 }
  0x91   :  { %v138_v39 = vmul.f32 %v388_v20, %v121_v36  ;;  %274 = vpow2.f32 %v190_v34 }
  0x92   :  { %v155_v40 = vmul.f32 %v139_v38, %v139_v38 }
  0x93   :  { %v154_v41 = vmul.f32 %v138_v39, %v138_v39 }
  0x94   :  { %v172_v42 = vsub.f32 %v394_v23, %v155_v40 }
  0x95   :  { %v171_v43 = vsub.f32 %v394_v23, %v154_v41  ;;  %v99_v44 = vpop.permute.xlu1 %98 }
  0x96   :  { %v94_v45 = vpop.permute.xlu0 %93  ;;  %v273_v46 = vpop.eup %272  ;;  %v198_v47 = vmul.f32 1.442695, %v172_v42  ;;  %v125_v49 = vsub.f32 %v99_v44, %v382_v17 }
  0x97   :  { %v196_v48 = vmul.f32 1.442695, %v171_v43  ;;  %v124_v50 = vsub.f32 %v94_v45, %v382_v17  ;;  %v275_v51 = vpop.eup %274  ;;  %217 = vst [vmem:[#allocation2 + $0x38] sm:$0xff] %v273_v46 }
  0x98   :  { %216 = vst [vmem:[#allocation2 + $0x30] sm:$0xff] %v275_v51  ;;  %276 = vpow2.f32 %v198_v47  ;;  %v142_v52 = vmul.f32 %v388_v20, %v125_v49 }
  0x99   :  { %v141_v53 = vmul.f32 %v388_v20, %v124_v50  ;;  %278 = vpow2.f32 %v196_v48 }
  0x9a   :  { %v158_v54 = vmul.f32 %v142_v52, %v142_v52 }
  0x9b   :  { %v157_v55 = vmul.f32 %v141_v53, %v141_v53 }
  0x9c   :  { %v175_v56 = vsub.f32 %v394_v23, %v158_v54 }
  0x9d   :  { %v174_v57 = vsub.f32 %v394_v23, %v157_v55 }
  0x9e   :  { %v109_v58 = vpop.permute.xlu0 %108  ;;  %v277_v59 = vpop.eup %276  ;;  %v204_v60 = vmul.f32 1.442695, %v175_v56 }
  0x9f   :  { %v202_v61 = vmul.f32 1.442695, %v174_v57  ;;  %v127_v62 = vsub.f32 %v109_v58, %v382_v17  ;;  %v279_v63 = vpop.eup %278  ;;  %220 = vst [vmem:[#allocation2 + $0x50] sm:$0xff] %v277_v59 }
  0xa0   :  { %219 = vst [vmem:[#allocation2 + $0x48] sm:$0xff] %v279_v63  ;;  %280 = vpow2.f32 %v204_v60 }
  0xa1   :  { %v144_v0 = vmul.f32 %v388_v20, %v127_v62  ;;  %282 = vpow2.f32 %v202_v61 }
  0xa3   :  { %v160_v1 = vmul.f32 %v144_v0, %v144_v0 }
  0xa5   :  { %v177_v2 = vsub.f32 %v394_v23, %v160_v1 }
  0xa6   :  { %v281_v3 = vpop.eup %280 }
  0xa7   :  { %v208_v4 = vmul.f32 1.442695, %v177_v2  ;;  %v283_v5 = vpop.eup %282  ;;  %223 = vst [vmem:[#allocation2 + $0x68] sm:$0xff] %v281_v3 }
  0xa8   :  { %222 = vst [vmem:[#allocation2 + $0x60] sm:$0xff] %v283_v5 }
  0xa9   :  { %284 = vpow2.f32 %v208_v4 }
  0xaf   :  { %v285_v17 = vpop.eup %284 }
  0xb0   :  { %225 = vst [vmem:[#allocation2 + $0x78] sm:$0xff] %v285_v17 }
  0xb1   :  { %238 = dma.vmem_to_hbm [thread:$0]  %s231_s1, 2048, %s233_s21, [#allocation3], %s314_s22, %s314_s22, %s315_s23  }
  0xb2   :  { %310 = dma.done.wait [#allocation3], 2048  }
  0xb3   :  { %311 = vsyncadd [#allocation3], 4294965248 }
  0xb4   :  { %243 = vsyncpa [#allocation3], 1 }

</bundles_post_ra>
